<compile_context>
chip_gen: v7x
topology: tpu7x:2x2x1
jax: 0.10.0
libtpu: 0.0.40
codegen_flags: <defaults>
</compile_context>

<pallas_src>
import functools

import jax
import jax.numpy as jnp
import numpy as np
from jax.experimental import pallas as pl
from jax.experimental.pallas import tpu as pltpu


def _round_up(x, m):
    return ((x + m - 1) // m) * m


def _conv_matmul_weights(w, W_in, Wo, stride, padding, lane_width, *, co_major=False):
    """Banded conv-as-matmul weights.

    Rows:    r = kh*lane_width + (w_in*Cin + ci)
    Columns: q = wo*Cout + co   (default)      or   q = co*Wo + wo  (co_major)
    Entry = w[kh, kw, ci, co] with kw = w_in + padding - wo*stride when that
    lies in [0, K), else 0 — i.e. the conv's WIDTH zero-padding is folded into
    the weight matrix, so the kernel only pads rows (height).
    """
    K, _, Cin, Cout = w.shape
    place = np.zeros((K, W_in, Wo), np.float32)
    for kw in range(K):
        for wo in range(Wo):
            w_in = wo * stride + kw - padding
            if 0 <= w_in < W_in:
                place[kw, w_in, wo] = 1.0
    if co_major:
        # (K, W_in, Cin, Cout, Wo) -> columns co*Wo + wo
        wb = jnp.einsum('xwv,hxio->hwiov', jnp.asarray(place), w)
        wb = wb.reshape(K, W_in * Cin, Cout * Wo)
    else:
        # (K, W_in, Cin, Wo, Cout) -> columns wo*Cout + co
        wb = jnp.einsum('xwv,hxio->hwivo', jnp.asarray(place), w)
        wb = wb.reshape(K, W_in * Cin, Wo * Cout)
    pad_rows = lane_width - W_in * Cin
    if pad_rows:
        wb = jnp.pad(wb, ((0, 0), (0, pad_rows), (0, 0)))
    return wb.reshape(K * lane_width, wb.shape[-1])


def _fused_baseconv_kernel(x_ref, w1_ref, b1_ref, w2_ref, b2_ref, o_ref,
                           pad1_ref, pad2_ref, *,
                           K, S, P, H, Hp1, Ho1, Wo1, Cout, Hp2, Ho2,
                           LW1, LW2):
    # x_ref   : (1, H, LW1)        bf16  lane-padded input, channels in lanes
    # w*_ref  : (K*LW*, cols)      bf16  banded conv-as-matmul weights
    # b*_ref  : (1, cols)          f32   bias, pre-tiled per output column
    # o_ref   : (1, Ho2, Cout*Wo2) f32   lane-dense output block
    # pad*_ref: (Hp*, LW*)         bf16  height-zero-padded activations

    def conv_relu(pad_ref, w_ref, b_ref, Ho, LW):
        # im2col LHS built as a value (no scratch round trip): K row-shifted
        # lane-aligned windows concatenated along the lane axis, then ONE MXU
        # matmul for the whole conv (K folded into the contraction).
        cols = []
        for kh in range(K):
            if S == 1:
                cols.append(pad_ref[kh:kh + Ho, :])
            else:
                # TODO(synk): stride>1 path is untested; consider pre-compacting
                # the strided rows in the wrapper instead of a strided read.
                cols.append(pad_ref[pl.ds(kh, Ho, stride=S), :])
        lhs = jnp.concatenate(cols, axis=-1)                  # (Ho, K*LW) bf16
        acc = jnp.dot(lhs, w_ref[...],
                      preferred_element_type=jnp.float32)     # (Ho, cols) f32
        return jnp.maximum(acc + b_ref[...], 0.0)             # f32 epilogue

    # ---- stage 1: height-pad the (already lane-padded) input, conv1+ReLU ---
    # Only the 2*P border rows are zeroed per step; interior rows are fully
    # overwritten each step (zero-once under pl.when is unsafe with the
    # parallel grid axis sharded across TensorCores).
    if P > 0:
        pad1_ref[0:P, :] = jnp.zeros((P, LW1), pad1_ref.dtype)
        pad1_ref[P + H:Hp1, :] = jnp.zeros((Hp1 - P - H, LW1), pad1_ref.dtype)
    pad1_ref[P:P + H, :] = x_ref[0]
    a1 = conv_relu(pad1_ref, w1_ref, b1_ref, Ho1, LW1)

    # ---- stage 2: stage-1 activation stays in VMEM (single bf16 cast) ------
    if P > 0:
        pad2_ref[0:P, :] = jnp.zeros((P, LW2), pad2_ref.dtype)
        pad2_ref[P + Ho1:Hp2, :] = jnp.zeros((Hp2 - P - Ho1, LW2), pad2_ref.dtype)
    if LW2 > Wo1 * Cout:
        # Lane-pad columns must be genuinely zero (stale NaN * 0-weight = NaN).
        pad2_ref[P:P + Ho1, Wo1 * Cout:LW2] = jnp.zeros(
            (Ho1, LW2 - Wo1 * Cout), pad2_ref.dtype)
    pad2_ref[P:P + Ho1, 0:Wo1 * Cout] = a1.astype(pad2_ref.dtype)
    a2 = conv_relu(pad2_ref, w2_ref, b2_ref, Ho2, LW2)

    # Lane-dense store: (Ho2, Cout*Wo2) with last dim a multiple of 128 here.
    o_ref[0] = a2.astype(o_ref.dtype)


def base_conv_forward(x_nchw, w1, b1, w2, b2, *, kernel_size, stride, padding):
    """Fused relu(conv2(relu(conv1(x)))) in one Pallas kernel.

    x_nchw: (N, Cin, H, W) f32; w*: (K, K, Cin, Cout) f32; b*: (Cout,) f32.
    `stride`/`padding` here are the EFFECTIVE conv stride / padding (i.e. after
    the module's positional-arg swap).
    """
    N, Cin, H, W = x_nchw.shape
    K, S, P = int(kernel_size), int(stride), int(padding)
    Cout = w1.shape[-1]
    if S < 1:
        raise ValueError(
            f"effective conv stride must be >= 1, got {S} (BaseConv's Conv2d "
            "positional args swap padding and stride).")

    Hp1 = H + 2 * P
    Ho1 = (H + 2 * P - K) // S + 1
    Wo1 = (W + 2 * P - K) // S + 1
    Hp2 = Ho1 + 2 * P
    Ho2 = (Ho1 + 2 * P - K) // S + 1
    Wo2 = (Wo1 + 2 * P - K) // S + 1
    assert Ho1 > 0 and Wo1 > 0 and Ho2 > 0 and Wo2 > 0

    LW1 = _round_up(W * Cin, 128)      # lane width of stage-1 activations
    LW2 = _round_up(Wo1 * Cout, 128)   # lane width of stage-2 activations

    # NCHW -> NHWC -> lane-merged (N, H, W*Cin), bf16, lane-padded to LW1 so
    # the input block is lane-dense (unmasked loads) and the kernel never has
    # to zero lane-pad columns for stage 1.  Boundary glue only.
    x_flat = jnp.transpose(x_nchw, (0, 2, 3, 1)).reshape(N, H, W * Cin)
    x_flat = x_flat.astype(jnp.bfloat16)
    if LW1 > W * Cin:
        x_flat = jnp.pad(x_flat, ((0, 0), (0, 0), (0, LW1 - W * Cin)))

    # Conv-as-single-matmul weights (built once outside the kernel), bf16 MXU
    # operands; biases stay f32, pre-tiled per output column.  Stage 2 uses
    # channel-major output columns so the final NCHW permute moves contiguous
    # Wo2-length runs.
    # TODO(synk): the banded weight grows O(W^2*Cin*Cout); for large W*Cin add
    # a Wo/output-column grid axis (tiling w2b and the output block) and set
    # vmem_limit_bytes explicitly before scaling up (v7x has only 64 MiB VMEM).
    w1b = _conv_matmul_weights(w1, W, Wo1, S, P, LW1).astype(jnp.bfloat16)
    w2b = _conv_matmul_weights(w2, Wo1, Wo2, S, P, LW2,
                               co_major=True).astype(jnp.bfloat16)
    b1t = jnp.tile(b1.astype(jnp.float32), Wo1).reshape(1, Wo1 * Cout)
    b2t = jnp.repeat(b2.astype(jnp.float32), Wo2).reshape(1, Cout * Wo2)

    kernel = functools.partial(
        _fused_baseconv_kernel, K=K, S=S, P=P, H=H,
        Hp1=Hp1, Ho1=Ho1, Wo1=Wo1, Cout=Cout, Hp2=Hp2, Ho2=Ho2,
        LW1=LW1, LW2=LW2)

    # FLOPs the banded matmuls actually execute (intentionally larger than the
    # algorithmic conv FLOPs: the width taps are folded into the band).
    flops = 2 * N * (Ho1 * (K * LW1) * (Wo1 * Cout)
                     + Ho2 * (K * LW2) * (Cout * Wo2))
    bytes_accessed = (x_flat.size * 2 + w1b.size * 2 + w2b.size * 2
                      + (b1t.size + b2t.size) * 4
                      + N * Ho2 * Cout * Wo2 * 4)

    # TODO(synk): matmul M is only Ho (=16 here) vs a 128/256-row MXU; for
    # bigger images fold several Ho tiles (or the batch) into one LHS while
    # keeping a parallel grid axis for the second v7x TensorCore.
    # TODO(synk): the four weight/bias inputs are grid-invariant; single-buffer
    # them (pipeline_mode=pl.Buffered) once weight VMEM becomes load-bearing.
    out = pl.pallas_call(
        kernel,
        out_shape=jax.ShapeDtypeStruct((N, Ho2, Cout * Wo2), jnp.float32),
        grid_spec=pltpu.PrefetchScalarGridSpec(
            num_scalar_prefetch=0,
            grid=(N,),
            in_specs=[
                pl.BlockSpec((1, H, LW1), lambda n: (n, 0, 0)),
                pl.BlockSpec((K * LW1, Wo1 * Cout), lambda n: (0, 0)),
                pl.BlockSpec((1, Wo1 * Cout), lambda n: (0, 0)),
                pl.BlockSpec((K * LW2, Cout * Wo2), lambda n: (0, 0)),
                pl.BlockSpec((1, Cout * Wo2), lambda n: (0, 0)),
            ],
            out_specs=pl.BlockSpec((1, Ho2, Cout * Wo2), lambda n: (n, 0, 0)),
            scratch_shapes=[
                pltpu.VMEM((Hp1, LW1), jnp.bfloat16),   # height-padded input
                pltpu.VMEM((Hp2, LW2), jnp.bfloat16),   # height-padded stage-1 act
            ],
        ),
        compiler_params=pltpu.CompilerParams(
            dimension_semantics=("parallel",),
        ),
        cost_estimate=pl.CostEstimate(
            flops=int(flops), transcendentals=0,
            bytes_accessed=int(bytes_accessed)),
    )(x_flat, w1b, b1t, w2b, b2t)

    # (N, Ho2, Cout*Wo2) -> (N, Ho2, Cout, Wo2) is a free metadata reshape; the
    # transpose to NCHW moves contiguous Wo2-length runs (channel-major cols).
    return jnp.transpose(out.reshape(N, Ho2, Cout, Wo2), (0, 2, 1, 3))


class BaseConvPallas:
    """JAX/Pallas port of BaseConv: relu(conv2) . relu(conv1), fused in one kernel."""

    def __init__(self, in_channels, out_channels, kernel_size, padding, stride, key):
        # Reproduce the positional-arg swap of the PyTorch module:
        # Conv2d(in, out, k, padding, stride) -> stride=padding, padding=stride.
        self.conv_stride = int(padding)
        self.conv_padding = int(stride)
        self.k = int(kernel_size)

        k1, k2, k3, k4 = jax.random.split(key, 4)
        fan1 = in_channels * kernel_size * kernel_size
        fan2 = out_channels * kernel_size * kernel_size
        bound1 = 1.0 / np.sqrt(fan1)
        bound2 = 1.0 / np.sqrt(fan2)
        w1 = jax.random.uniform(
            k1, (out_channels, in_channels, kernel_size, kernel_size),
            minval=-bound1, maxval=bound1, dtype=jnp.float32)
        b1 = jax.random.uniform(k2, (out_channels,), minval=-bound1,
                                maxval=bound1, dtype=jnp.float32)
        w2 = jax.random.uniform(
            k3, (out_channels, out_channels, kernel_size, kernel_size),
            minval=-bound2, maxval=bound2, dtype=jnp.float32)
        b2 = jax.random.uniform(k4, (out_channels,), minval=-bound2,
                                maxval=bound2, dtype=jnp.float32)

        # Kernel layout (KH, KW, Cin, Cout).
        self.w1 = jnp.transpose(w1, (2, 3, 1, 0))
        self.b1 = b1
        self.w2 = jnp.transpose(w2, (2, 3, 1, 0))
        self.b2 = b2

    def __call__(self, x_nchw):
        return base_conv_forward(
            x_nchw.astype(jnp.float32), self.w1, self.b1, self.w2, self.b2,
            kernel_size=self.k, stride=self.conv_stride,
            padding=self.conv_padding)


def _reference(x_nchw, mod):
    """Pure-JAX reference (lax.conv, bf16 operands, f32 accumulation)."""
    def conv(x, w_khwc_io, b, stride, padding):
        w_oihw = jnp.transpose(w_khwc_io, (3, 2, 0, 1)).astype(jnp.bfloat16)
        y = jax.lax.conv_general_dilated(
            x.astype(jnp.bfloat16), w_oihw,
            window_strides=(stride, stride),
            padding=[(padding, padding), (padding, padding)],
            dimension_numbers=("NCHW", "OIHW", "NCHW"),
            preferred_element_type=jnp.float32)
        return jnp.maximum(y + b[None, :, None, None], 0.0)

    y = conv(x_nchw.astype(jnp.float32), mod.w1, mod.b1,
             mod.conv_stride, mod.conv_padding)
    y = conv(y, mod.w2, mod.b2, mod.conv_stride, mod.conv_padding)
    return y


if __name__ == "__main__":
    key = jax.random.PRNGKey(0)
    kx, kp = jax.random.split(key)

    N, Cin, H, W = 2, 4, 16, 16
    Cout, Ksz = 8, 3
    # Module args: (in, out, kernel_size, padding, stride) — with padding=1,
    # stride=1 the (documented) positional swap is benign at these settings.
    mod = BaseConvPallas(Cin, Cout, Ksz, padding=1, stride=1, key=kp)

    x = jax.random.normal(kx, (N, Cin, H, W), dtype=jnp.float32)

    out = jax.block_until_ready(mod(x))
    ref = jax.block_until_ready(_reference(x, mod))

    assert out.shape == ref.shape, (out.shape, ref.shape)
    np.testing.assert_allclose(np.asarray(out), np.asarray(ref),
                               rtol=5e-3, atol=5e-3)

    print("KERNEL_OK")
</pallas_src>

<mosaic_0001>
module attributes {stable_mosaic.version = 11 : i64} {
  func.func @_fused_baseconv_kernel(%arg0: i32, %arg1: memref<1x16x128xbf16, #tpu.memory_space<vmem>>, %arg2: memref<384x128xbf16, #tpu.memory_space<vmem>>, %arg3: memref<1x128xf32, #tpu.memory_space<vmem>>, %arg4: memref<384x128xbf16, #tpu.memory_space<vmem>>, %arg5: memref<1x128xf32, #tpu.memory_space<vmem>>, %arg6: memref<1x16x128xf32, #tpu.memory_space<vmem>>, %arg7: memref<18x128xbf16, #tpu.memory_space<vmem>>, %arg8: memref<18x128xbf16, #tpu.memory_space<vmem>>) attributes {dimension_semantics = [#tpu.dimension_semantics<parallel>], iteration_bounds = array<i64: 2>, scalar_prefetch = 0 : i64, scratch_operands = 2 : i64, tpu.core_type = #tpu.core_type<tc>, window_params = [{transform_indices = @transform_0, window_bounds = array<i64: 1, 16, 128>}, {pipeline_mode = #tpu.pipeline_mode<synchronous>, transform_indices = @transform_1, window_bounds = array<i64: 384, 128>}, {pipeline_mode = #tpu.pipeline_mode<synchronous>, transform_indices = @transform_2, window_bounds = array<i64: 1, 128>}, {pipeline_mode = #tpu.pipeline_mode<synchronous>, transform_indices = @transform_3, window_bounds = array<i64: 384, 128>}, {pipeline_mode = #tpu.pipeline_mode<synchronous>, transform_indices = @transform_4, window_bounds = array<i64: 1, 128>}, {transform_indices = @transform_5, window_bounds = array<i64: 1, 16, 128>}]} {
    %cst = arith.constant 0.000000e+00 : bf16
    %0 = vector.broadcast %cst : bf16 to vector<1x128xbf16>
    %c0 = arith.constant 0 : index
    %c0_0 = arith.constant 0 : index
    %1 = vector.load %arg7[%c0, %c0_0] : memref<18x128xbf16, #tpu.memory_space<vmem>>, vector<1x128xbf16>
    tpu.vector_store %arg7[%c0, %c0_0], %0 {strides = array<i32>} : memref<18x128xbf16, #tpu.memory_space<vmem>>, vector<1x128xbf16>,
    %cst_1 = arith.constant 0.000000e+00 : bf16
    %2 = vector.broadcast %cst_1 : bf16 to vector<1x128xbf16>
    %c17 = arith.constant 17 : index
    %c0_2 = arith.constant 0 : index
    %3 = vector.load %arg7[%c17, %c0_2] : memref<18x128xbf16, #tpu.memory_space<vmem>>, vector<1x128xbf16>
    tpu.vector_store %arg7[%c17, %c0_2], %2 {strides = array<i32>} : memref<18x128xbf16, #tpu.memory_space<vmem>>, vector<1x128xbf16>,
    %c0_3 = arith.constant 0 : index
    %c0_4 = arith.constant 0 : index
    %c0_5 = arith.constant 0 : index
    %4 = vector.load %arg1[%c0_3, %c0_4, %c0_5] : memref<1x16x128xbf16, #tpu.memory_space<vmem>>, vector<1x16x128xbf16>
    %5 = vector.shape_cast %4 : vector<1x16x128xbf16> to vector<16x128xbf16>
    %c1 = arith.constant 1 : index
    %c0_6 = arith.constant 0 : index
    %6 = vector.load %arg7[%c1, %c0_6] : memref<18x128xbf16, #tpu.memory_space<vmem>>, vector<16x128xbf16>
    tpu.vector_store %arg7[%c1, %c0_6], %5 {strides = array<i32>} : memref<18x128xbf16, #tpu.memory_space<vmem>>, vector<16x128xbf16>,
    %c0_7 = arith.constant 0 : index
    %c0_8 = arith.constant 0 : index
    %7 = vector.load %arg7[%c0_7, %c0_8] : memref<18x128xbf16, #tpu.memory_space<vmem>>, vector<16x128xbf16>
    %c1_9 = arith.constant 1 : index
    %c0_10 = arith.constant 0 : index
    %8 = vector.load %arg7[%c1_9, %c0_10] : memref<18x128xbf16, #tpu.memory_space<vmem>>, vector<16x128xbf16>
    %c2 = arith.constant 2 : index
    %c0_11 = arith.constant 0 : index
    %9 = vector.load %arg7[%c2, %c0_11] : memref<18x128xbf16, #tpu.memory_space<vmem>>, vector<16x128xbf16>
    %10 = tpu.concatenate %7, %8, %9 in 1 : vector<16x128xbf16>, vector<16x128xbf16>, vector<16x128xbf16> -> vector<16x384xbf16>
    %c0_12 = arith.constant 0 : index
    %c0_13 = arith.constant 0 : index
    %11 = vector.load %arg2[%c0_12, %c0_13] : memref<384x128xbf16, #tpu.memory_space<vmem>>, vector<384x128xbf16>
    %cst_14 = arith.constant dense<0.000000e+00> : vector<16x128xf32>
    %12 = tpu.matmul %10, %11, %cst_14 {dimension_numbers = #tpu.dot_dimension_numbers<[1], [0], [0], [1], [0, 0, 1, 1], [], []>} : vector<16x384xbf16>, vector<384x128xbf16>, vector<16x128xf32> -> vector<16x128xf32>
    %c0_15 = arith.constant 0 : index
    %c0_16 = arith.constant 0 : index
    %13 = vector.load %arg3[%c0_15, %c0_16] : memref<1x128xf32, #tpu.memory_space<vmem>>, vector<1x128xf32>
    %14 = vector.broadcast %13 : vector<1x128xf32> to vector<16x128xf32>
    %15 = arith.addf %12, %14 : vector<16x128xf32>
    %cst_17 = arith.constant 0.000000e+00 : f32
    %16 = vector.broadcast %cst_17 : f32 to vector<16x128xf32>
    %17 = arith.maximumf %15, %16 : vector<16x128xf32>
    %cst_18 = arith.constant 0.000000e+00 : bf16
    %18 = vector.broadcast %cst_18 : bf16 to vector<1x128xbf16>
    %c0_19 = arith.constant 0 : index
    %c0_20 = arith.constant 0 : index
    %19 = vector.load %arg8[%c0_19, %c0_20] : memref<18x128xbf16, #tpu.memory_space<vmem>>, vector<1x128xbf16>
    tpu.vector_store %arg8[%c0_19, %c0_20], %18 {strides = array<i32>} : memref<18x128xbf16, #tpu.memory_space<vmem>>, vector<1x128xbf16>,
    %cst_21 = arith.constant 0.000000e+00 : bf16
    %20 = vector.broadcast %cst_21 : bf16 to vector<1x128xbf16>
    %c17_22 = arith.constant 17 : index
    %c0_23 = arith.constant 0 : index
    %21 = vector.load %arg8[%c17_22, %c0_23] : memref<18x128xbf16, #tpu.memory_space<vmem>>, vector<1x128xbf16>
    tpu.vector_store %arg8[%c17_22, %c0_23], %20 {strides = array<i32>} : memref<18x128xbf16, #tpu.memory_space<vmem>>, vector<1x128xbf16>,
    %22 = arith.truncf %17 : vector<16x128xf32> to vector<16x128xbf16>
    %c1_24 = arith.constant 1 : index
    %c0_25 = arith.constant 0 : index
    %23 = vector.load %arg8[%c1_24, %c0_25] : memref<18x128xbf16, #tpu.memory_space<vmem>>, vector<16x128xbf16>
    tpu.vector_store %arg8[%c1_24, %c0_25], %22 {strides = array<i32>} : memref<18x128xbf16, #tpu.memory_space<vmem>>, vector<16x128xbf16>,
    %c0_26 = arith.constant 0 : index
    %c0_27 = arith.constant 0 : index
    %24 = vector.load %arg8[%c0_26, %c0_27] : memref<18x128xbf16, #tpu.memory_space<vmem>>, vector<16x128xbf16>
    %c1_28 = arith.constant 1 : index
    %c0_29 = arith.constant 0 : index
    %25 = vector.load %arg8[%c1_28, %c0_29] : memref<18x128xbf16, #tpu.memory_space<vmem>>, vector<16x128xbf16>
    %c2_30 = arith.constant 2 : index
    %c0_31 = arith.constant 0 : index
    %26 = vector.load %arg8[%c2_30, %c0_31] : memref<18x128xbf16, #tpu.memory_space<vmem>>, vector<16x128xbf16>
    %27 = tpu.concatenate %24, %25, %26 in 1 : vector<16x128xbf16>, vector<16x128xbf16>, vector<16x128xbf16> -> vector<16x384xbf16>
    %c0_32 = arith.constant 0 : index
    %c0_33 = arith.constant 0 : index
    %28 = vector.load %arg4[%c0_32, %c0_33] : memref<384x128xbf16, #tpu.memory_space<vmem>>, vector<384x128xbf16>
    %cst_34 = arith.constant dense<0.000000e+00> : vector<16x128xf32>
    %29 = tpu.matmul %27, %28, %cst_34 {dimension_numbers = #tpu.dot_dimension_numbers<[1], [0], [0], [1], [0, 0, 1, 1], [], []>} : vector<16x384xbf16>, vector<384x128xbf16>, vector<16x128xf32> -> vector<16x128xf32>
    %c0_35 = arith.constant 0 : index
    %c0_36 = arith.constant 0 : index
    %30 = vector.load %arg5[%c0_35, %c0_36] : memref<1x128xf32, #tpu.memory_space<vmem>>, vector<1x128xf32>
    %31 = vector.broadcast %30 : vector<1x128xf32> to vector<16x128xf32>
    %32 = arith.addf %29, %31 : vector<16x128xf32>
    %cst_37 = arith.constant 0.000000e+00 : f32
    %33 = vector.broadcast %cst_37 : f32 to vector<16x128xf32>
    %34 = arith.maximumf %32, %33 : vector<16x128xf32>
    %c0_38 = arith.constant 0 : index
    %c0_39 = arith.constant 0 : index
    %c0_40 = arith.constant 0 : index
    %35 = vector.load %arg6[%c0_38, %c0_39, %c0_40] : memref<1x16x128xf32, #tpu.memory_space<vmem>>, vector<1x16x128xf32>
    %36 = vector.shape_cast %35 : vector<1x16x128xf32> to vector<16x128xf32>
    %37 = vector.shape_cast %34 : vector<16x128xf32> to vector<1x16x128xf32>
    tpu.vector_store %arg6[%c0_38, %c0_39, %c0_40], %37 {strides = array<i32>} : memref<1x16x128xf32, #tpu.memory_space<vmem>>, vector<1x16x128xf32>,
    return
  }
  func.func @transform_0(%arg0: i32) -> (i32, i32, i32) {
    %c0_i32 = arith.constant 0 : i32
    %c0_i32_0 = arith.constant 0 : i32
    %c0_i32_1 = arith.constant 0 : i32
    return %arg0, %c0_i32, %c0_i32_0 : i32, i32, i32
  }
  func.func @transform_1(%arg0: i32) -> (i32, i32) {
    %c0_i32 = arith.constant 0 : i32
    %c0_i32_0 = arith.constant 0 : i32
    %c0_i32_1 = arith.constant 0 : i32
    return %c0_i32, %c0_i32_0 : i32, i32
  }
  func.func @transform_2(%arg0: i32) -> (i32, i32) {
    %c0_i32 = arith.constant 0 : i32
    %c0_i32_0 = arith.constant 0 : i32
    %c0_i32_1 = arith.constant 0 : i32
    return %c0_i32, %c0_i32_0 : i32, i32
  }
  func.func @transform_3(%arg0: i32) -> (i32, i32) {
    %c0_i32 = arith.constant 0 : i32
    %c0_i32_0 = arith.constant 0 : i32
    %c0_i32_1 = arith.constant 0 : i32
    return %c0_i32, %c0_i32_0 : i32, i32
  }
  func.func @transform_4(%arg0: i32) -> (i32, i32) {
    %c0_i32 = arith.constant 0 : i32
    %c0_i32_0 = arith.constant 0 : i32
    %c0_i32_1 = arith.constant 0 : i32
    return %c0_i32, %c0_i32_0 : i32, i32
  }
  func.func @transform_5(%arg0: i32) -> (i32, i32, i32) {
    %c0_i32 = arith.constant 0 : i32
    %c0_i32_0 = arith.constant 0 : i32
    %c0_i32_1 = arith.constant 0 : i32
    return %arg0, %c0_i32, %c0_i32_0 : i32, i32, i32
  }
}

</mosaic_0001>

<bundles_post_ra>
// kernel: tpu_custom_call.1
= control target key start
LH: loop header
LB: loop body
LE: loop exit
PB: predicated region body
PF: predicated region fallthrough
CT: control target
= control target key end

     0   :  { %10 = vsyncpa [#allocation5], 0  ;;  %s1926_s0 = inlined_call_operand.hbm [shape: bf16[2,16,128], index: 0, kind: input, shape index: {}]   ;;  %s1927_s1 = inlined_call_operand.hbm [shape: bf16[384,128], index: 1, kind: input, shape index: {}]   ;;  %s1928_s2 = inlined_call_operand.vmem [shape: f32[1,128], index: 2, kind: input, shape index: {}]   ;;  %s1929_s3 = inlined_call_operand.hbm [shape: bf16[384,128], index: 3, kind: input, shape index: {}]   ;;  %s1930_s4 = inlined_call_operand.vmem [shape: f32[1,128], index: 4, kind: input, shape index: {}]   ;;  %s1931_s5 = inlined_call_operand.hbm [shape: f32[2,16,128], index: 5, kind: output, shape index: {}]  }
   0x1   :  { %12 = vsyncpa [#allocation5 + $0x1], 0 }
   0x2   :  { %13 = vsyncpa [#allocation8], 0 }
   0x3   :  { %14 = vsyncpa [#allocation6], 0 }
   0x4   :  { %16 = vsyncpa [#allocation6 + $0x1], 0  ;;  %s1605_s18 = smov 0   ;;  %s1607_s19 = smov 0  }
   0x5   :  { %s1609_s20 = smov 0   ;;  %s1611_s21 = smov 0  }
   0x6 LB: > { %s1626_s22 = sadd.s32 4294967295, %s1563_s21   ;;  %s1098_s23 = sadd.s32 4294967294, %s1563_s21   ;;  %s1563_s21 = sphi %s1611_s21, %s1959_s21   ;;  %s1559_s20 = sphi %s1609_s20, %s1958_s20   ;;  %s1555_s19 = sphi %s1607_s19, %s1957_s19   ;;  %s1551_s18 = sphi %s1605_s18, %s1956_s18  }
   0x7   : > { %p42_p0 = scmp.ne.s32.totalorder %s1555_s19, %s1551_s18  ;;  %p1932_p1 = scmp.eq.s32.totalorder %s1626_s22, 0 }
   0x8   : > { %p156_p3 = scmp.eq.s32.totalorder %s1098_s23, 1  ;;  %p1099_p5 = scmp.ge.s32.totalorder %s1563_s21, 1 }
   0x9   : > { %p1635_p4 = por %p1932_p1, %p42_p0  ;;  %p163_p7 = scmp.lt.s32.totalorder %s1563_s21, 3 }
   0xa   : > { %p1640_p6 = por %p156_p3, %p42_p0  ;;  %s1565_s27 = smov [#allocation7]  }
   0xb   : > { %s1935_s24 = scalar_select %p1635_p4, 1, 0 }
   0xc   : > { %s1936_s25 = scalar_select %p1640_p6, 1, 0 }
   0xd   : > { %p1645_p8 = pnand %p1099_p5, %p163_p7  ;;  %s175_s28 = sshll.u32 %s1565_s27, 4  ;;  %s1649_s28 = int_to_ptr.vmem [resolvable:$true] %s175_s28 }
   0xe   : > { %s1566_s30 = smov [#allocation9]   ;;  %s1407_s9 = scalar_lea.hbm %s1927_s1, 3072 }
   0xf   : > { %p1292_p9 = pneg %p1645_p8  ;;  %s191_s6 = sshll.u32 %s1566_s30, 4  ;;  %s1660_s6 = int_to_ptr.vmem [resolvable:$true] %s191_s6 }
  0x10   : > { %p1408_p12 = scmp.ne.s32.totalorder %s1927_s1, %s1407_s9  ;;  %p1414_p5 = scmp.lt.u32.totalorder %s1407_s9, %s1927_s1 }
  0x11   : > { %p1656_p11 = pnand %p1292_p9, %p1932_p1 }
  0x13   : > { %p1409_p13 = pneg %p1656_p11 }
  0x15   : > { %p1410_p0 = pnand %p1409_p13, %p1408_p12 }
  0x17   : > { %p1411_p3 = pneg %p1410_p0 }
  0x19   : > { %p1416_p7 = pnand %p1414_p5, %p1411_p3 }
  0x1b   : > { %1419 = shalt.err (!%p1416_p7)
}
  0x1c   : > { %s1420_s14 = scalar_lea.vmem %s1649_s28, 3072  ;;  %p1428_p2 = scmp.lt.s32.totalorder %s1649_s28, %s1649_s28 }
  0x1d   : > { %p1421_p9 = scmp.ne.s32.totalorder %s1649_s28, %s1420_s14  ;;  %p1429_p12 = scmp.lt.s32.totalorder %s1420_s14, %s1420_s14 }
  0x1f   : > { %p1423_p10 = pnand %p1421_p9, %p1409_p13  ;;  %p1430_p0 = por %p1429_p12, %p1428_p2 }
  0x21   : > { %p1424_p1 = pneg %p1423_p10 }
  0x23   : > { %p1431_p6 = pnand %p1430_p0, %p1424_p1 }
  0x25   : > { %1434 = shalt.err (!%p1431_p6)
}
  0x26   : > { %s1567_s15 = smov 64   ;;  %s1568_s16 = smov 4  }
  0x27   : > { %1295 = dma.hbm_to_vmem [thread:$0]  (!%p1656_p11), %s1927_s1, 3072, %s1649_s28, [#allocation8], %s1567_s15, %s1567_s15, %s1568_s16  }
  0x28   : > { %s1435_s7 = scalar_lea.hbm %s1929_s3, 3072 }
  0x29   : > { %p1436_p1 = scmp.ne.s32.totalorder %s1929_s3, %s1435_s7  ;;  %p1442_p10 = scmp.lt.u32.totalorder %s1435_s7, %s1929_s3 }
  0x2b   : > { %p1438_p2 = pnand %p1436_p1, %p1409_p13 }
  0x2d   : > { %p1439_p6 = pneg %p1438_p2 }
  0x2f   : > { %p1444_p3 = pnand %p1442_p10, %p1439_p6 }
  0x31   : > { %1447 = shalt.err (!%p1444_p3)
}
  0x32   : > { %s1448_s28 = scalar_lea.vmem %s1660_s6, 3072  ;;  %p1456_p12 = scmp.lt.s32.totalorder %s1660_s6, %s1660_s6 }
  0x33   : > { %p1449_p5 = scmp.ne.s32.totalorder %s1660_s6, %s1448_s28  ;;  %p1457_p0 = scmp.lt.s32.totalorder %s1448_s28, %s1448_s28 }
  0x35   : > { %p1451_p7 = pnand %p1449_p5, %p1409_p13  ;;  %p1458_p1 = por %p1457_p0, %p1456_p12 }
  0x37   : > { %p1452_p9 = pneg %p1451_p7 }
  0x39   : > { %p1459_p2 = pnand %p1458_p1, %p1452_p9 }
  0x3b   : > { %1462 = shalt.err (!%p1459_p2)
}
  0x3c   : > { %1298 = dma.hbm_to_vmem [thread:$0]  (!%p1656_p11), %s1929_s3, 3072, %s1660_s6, [#allocation8], %s1567_s15, %s1567_s15, %s1568_s16  }
  0x3d   : > { %s1721_s29 = sadd.s32 1, %s1563_s21   ;;  %s29_s14 = sadd.s32 1, %s1559_s20 }
  0x3e   : > { %s26_s17 = ssub.s32 %s1563_s21, %s1721_s29  ;;  %p36_p13 = scmp.ne.s32.totalorder %s1559_s20, %s1555_s19 }
  0x3f   : > { %p27_p6 = scmp.eq.s32.totalorder %s26_s17, 0  ;;  %p37_p10 = scmp.eq.s32.totalorder %s1563_s21, 0 }
  0x40   : > { %p1939_p3 = scmp.eq.s32.totalorder %s1626_s22, 1  ;;  %p1309_p7 = scmp.lt.s32.totalorder %s1563_s21, 2 }
  0x41   : > { %s1737_s27 = scalar_select %p27_p6, %s1559_s20, %s29_s14  }
  0x42   : > { %p1731_p5 = por %p1939_p3, %p36_p13  ;;  %p38_p9 = por %p37_p10, %p36_p13 }
  0x43   : > { %s208_s30 = sand.u32 1, %s1559_s20   ;;  %s1174_s6 = sshll.u32 %s1563_s21, 7 }
  0x44   : > { %s1940_s23 = scalar_select %p1731_p5, 1, 0 }
  0x45   : > { %s1103_s7 = sshll.u32 %s208_s30, 3  ;;  %s1744_s10 = scalar_lea.hbm %s1926_s0, %s1174_s6 }
  0x46   : > { %s212_s11 = scalar_lea.vmem [#allocation4], %s1103_s7  ;;  %p1748_p11 = pnand %p1309_p7, %p38_p9 }
  0x47   : > { %s219_s28 = sshll.u32 %s212_s11, 4  ;;  %s1752_s13 = scalar_lea.sflag [#allocation5], %s208_s30  ;;  %s1746_s28 = int_to_ptr.vmem [resolvable:$true] %s219_s28 }
  0x48   : > { %s1463_s14 = scalar_lea.hbm %s1744_s10, 128  ;;  %p1465_p0 = pneg %p1748_p11 }
  0x49   : > { %p1464_p12 = scmp.ne.s32.totalorder %s1744_s10, %s1463_s14  ;;  %s1468_s6 = scalar_lea.hbm %s1926_s0, 256 }
  0x4a   : > { %p1469_p13 = scmp.lt.u32.totalorder %s1744_s10, %s1926_s0  ;;  %p1470_p6 = scmp.lt.u32.totalorder %s1468_s6, %s1463_s14 }
  0x4b   : > { %p1466_p1 = pnand %p1465_p0, %p1464_p12  ;;  %p1472_p3 = scmp.lt.u32.totalorder %s1463_s14, %s1744_s10 }
  0x4c   : > { %p1471_p10 = por %p1470_p6, %p1469_p13 }
  0x4d   : > { %p1467_p2 = pneg %p1466_p1 }
  0x4e   : > { %p1473_p7 = por %p1472_p3, %p1471_p10 }
  0x50   : > { %p1474_p9 = pnand %p1473_p7, %p1467_p2 }
  0x52   : > { %1477 = shalt.err (!%p1474_p9)
}
  0x53   : > { %s1478_s30 = scalar_lea.vmem %s1746_s28, 128  ;;  %s1569_s11 = smov [#allocation4]  }
  0x54   : > { %p1479_p12 = scmp.ne.s32.totalorder %s1746_s28, %s1478_s30  ;;  %s1483_s17 = sshll.u32 %s1569_s11, 4  ;;  %s1484_s17 = int_to_ptr.vmem [resolvable:$false] %s1483_s17 }
  0x55   : > { %s1485_s7 = scalar_lea.vmem %s1484_s17, 256  ;;  %p1486_p4 = scmp.lt.s32.totalorder %s1746_s28, %s1484_s17 }
  0x56   : > { %p1481_p1 = pnand %p1479_p12, %p1465_p0  ;;  %p1487_p13 = scmp.lt.s32.totalorder %s1485_s7, %s1478_s30 }
  0x58   : > { %p1482_p5 = pneg %p1481_p1  ;;  %p1488_p6 = por %p1487_p13, %p1486_p4 }
  0x5a   : > { %p1489_p10 = pnand %p1488_p6, %p1482_p5 }
  0x5c   : > { %1492 = shalt.err (!%p1489_p10)
}
  0x5d   : > { %1302 = dma.hbm_to_vmem [thread:$0]  (!%p1748_p11), %s1744_s10, 128, %s1746_s28, %s1752_s13, %s1567_s15, %s1567_s15, %s1568_s16  }
  0x5e   : > { %231 = sbr.rel (%p1645_p8) target bundleno = 630 (0x276), region = 40  ;;  %s1786_s14 = sand.u32 (!%p1645_p8), 1, %s1555_s19  }
  0x5f   : > { %s1107_s6 = sshll.u32 (!%p1645_p8), %s1786_s14, 3  ;;  %s234_s8 = scalar_lea.sflag (!%p1645_p8), [#allocation5], %s1786_s14 }
  0x60   : > { %s1790_s9 = scalar_lea.vmem (!%p1645_p8), [#allocation4], %s1107_s6  ;;  %p1942_p4 = scmp.ne.s32.totalorder (!%p1645_p8), %s1935_s24, 0 }
  0x65   : > { %1538 = dma.done.wait (%p1942_p4), %s234_s8, 128  }
  0x66   : > { %1540 = vsyncadd (%p1942_p4), %s234_s8, 4294967168  ;;  %p1943_p5 = scmp.eq.s32.totalorder %s1626_s22, 0 }
  0x68   : > { %1542 = dma.done.wait (%p1943_p5), [#allocation8], 6144   ;;  %p1944_p8 = pmov %p1943_p5 }
  0x69   : > { %v1570_v0 = vmov 0.0   ;;  %vm1571_vm0 = vmmov 0   ;;  %v1353_v1 = vld [vmem:[#allocation7 + $0x40] sm:$0xff]   ;;  %vm274_vm1 = vsmask.f32 256  ;;  %v1356_v4 = vld [vmem:[#allocation7 + $0x48] sm:$0xff]  }
  0x6a   : > { %1544 = vsyncadd (%p1944_p8), [#allocation8], 4294961152  ;;  %1240 = vmatprep.subr.bf16.mxu1 %v1570_v0  ;;  %1256 = vmatprep.mubr.msk.bf16.mxu1 %vm1571_vm0, %v1570_v0  ;;  %v1354_v2 = vld [vmem:[#allocation7] sm:$0xff]   ;;  %v1357_v5 = vld [vmem:[#allocation7 + $0x8] sm:$0xff]   ;;  %vm273_vm2 = vcmask 1040384   ;;  %vm308_vm8 = vcmask 1043456  }
  0x6b   : > { %1178 = vmatprep.subr.bf16.mxu0 %v1353_v1  ;;  %v1355_v3 = vld [vmem:[#allocation7 + $0x80] sm:$0xff]   ;;  %v1358_v6 = vld [vmem:[#allocation7 + $0x88] sm:$0xff]   ;;  %v1359_v7 = vld [vmem:[#allocation7 + $0x50] sm:$0xff]   ;;  %vm279_vm4 = vsmask.f32 7938  ;;  %vm347_vm10 = vcmask 1046528  }
  0x6c   : > { %1179 = vmatpush3.bf16.msra.mxu0 %v1354_v2  ;;  %1241 = vmatpush3.bf16.msra.mxu1 %v1355_v3  ;;  %v1360_v8 = vld [vmem:[#allocation7 + $0x10] sm:$0xff]   ;;  %v1362_v10 = vld [vmem:[#allocation7 + $0x58] sm:$0xff]   ;;  %v1365_v13 = vld [vmem:[#allocation7 + $0x60] sm:$0xff]   ;;  %vm286_vm6 = vsmask.f32 4368  ;;  %s1110_s15 = sshll.u32 %s1786_s14, 4 }
  0x6d   : > { %1180 = vmatprep.subr.bf16.mxu0 %v1356_v4  ;;  %1242 = vmatprep.subr.bf16.mxu1 %v1570_v0  ;;  %v1361_v9 = vld [vmem:[#allocation7 + $0x90] sm:$0xff]   ;;  %v1363_v11 = vld [vmem:[#allocation7 + $0x18] sm:$0xff]   ;;  %vm1808_vm3 = vmand %vm273_vm2, %vm274_vm1  ;;  %vm330_vm11 = vsmask.f32 7424  ;;  %s271_s28 = scalar_lea.vmem [#allocation10], %s1110_s15  ;;  %s1177_s13 = sshll.u32 %s1626_s22, 8 }
  0x6e   : > { %v1364_v12 = vld [vmem:[#allocation7 + $0x98] sm:$0xff]   ;;  %v1366_v15 = vld [vmem:[#allocation7 + $0x20] sm:$0xff]   ;;  %v1368_v17 = vld [vmem:[#allocation7 + $0x68] sm:$0xff]   ;;  %s1006_s12 = sshll.u32 %s271_s28, 4  ;;  %s1882_s17 = scalar_lea.hbm %s1931_s5, %s1177_s13  ;;  %s1877_s12 = int_to_ptr.vmem [resolvable:$true] %s1006_s12 }
  0x6f   : > { %v1367_v16 = vld [vmem:[#allocation7 + $0xa0] sm:$0xff]   ;;  %vm1815_vm5 = vmand %vm273_vm2, %vm279_vm4  ;;  %v1369_v19 = vld [vmem:[#allocation7 + $0x28] sm:$0xff]   ;;  %s993_s7 = scalar_lea.sflag [#allocation6], %s1786_s14  ;;  %s1493_s6 = scalar_lea.vmem %s1877_s12, 256 }
  0x70   : > { %1181 = vmatpush3.bf16.msra.mxu0 %v1357_v5  ;;  %1243 = vmatpush3.bf16.msra.mxu1 %v1358_v6  ;;  %v1370_v20 = vld [vmem:[#allocation7 + $0xa8] sm:$0xff]   ;;  %v1371_v21 = vld [vmem:[#allocation7 + $0x70] sm:$0xff]   ;;  %v1374_v24 = vld [vmem:[#allocation7 + $0x78] sm:$0xff]   ;;  %p1494_p11 = scmp.ne.s32.totalorder %s1877_s12, %s1493_s6  ;;  %p1953_p0 = scmp.ne.s32.totalorder %s1940_s23, 0 }
  0x71   : > { %1182 = vmatprep.subr.bf16.mxu0 %v1359_v7  ;;  %1244 = vmatprep.subr.bf16.mxu1 %v1570_v0  ;;  %v1372_v22 = vld [vmem:[#allocation7 + $0x30] sm:$0xff]   ;;  %v276_v25 = vld [vmem:[#allocation2] sm:$0x1]  ;;  %v281_v26 = vld [vmem:[#allocation2 + $0x8] sm:$0x1]  ;;  %s1572_s22 = smov [#allocation10]  }
  0x72   : > { %v1373_v23 = vld [vmem:[#allocation7 + $0xb0] sm:$0xff]   ;;  %v277_v28 = vsel %vm1808_vm3, 0, %v276_v25  ;;  %v282_v29 = vsel %vm1815_vm5, 0, %v281_v26  ;;  %vm1829_vm7 = vmor %vm274_vm1, %vm286_vm6  ;;  %v1375_v37 = vld [vmem:[#allocation7 + $0x38] sm:$0xff]   ;;  %p1495_p2 = pnand %p1494_p11, %p1953_p0  ;;  %s1497_s8 = sshll.u32 %s1572_s22, 4  ;;  %s1498_s8 = int_to_ptr.vmem [resolvable:$false] %s1497_s8 }
  0x73   : > { %v284_v27 = vld [vmem:[%s1790_s9] sm:$0xf]  ;;  %v285_v30 = vld [vmem:[%s1790_s9 + $0x4] sm:$0xf]  ;;  %278 = vst [vmem:[#allocation2] sm:$0x1] %v277_v28  ;;  %vm1835_vm9 = vmand %vm308_vm8, %vm279_vm4  ;;  %p1500_p7 = scmp.lt.s32.totalorder %s1877_s12, %s1498_s8 }
  0x74   : > { %1183 = vmatpush3.bf16.msra.mxu0 %v1360_v8  ;;  %1245 = vmatpush3.bf16.msra.mxu1 %v1361_v9  ;;  %v289_v31 = vshrl.u32 %v284_v27, 16  ;;  %v292_v32 = vshll.u32 %v284_v27, 16  ;;  %283 = vst [vmem:[#allocation2 + $0x8] sm:$0x1] %v282_v29  ;;  %v297_v33 = vshrl.u32 %v285_v30, 16  ;;  %v300_v34 = vshll.u32 %v285_v30, 16  ;;  %p1496_p3 = pneg %p1495_p2 }
  0x75   : > { %1184 = vmatprep.subr.bf16.mxu0 %v1362_v10  ;;  %1246 = vmatprep.subr.bf16.mxu1 %v1570_v0  ;;  %v1378_v40 = vld [vmem:[#allocation7 + $0xb8] sm:$0xff]   ;;  %v1380_v3 = vld [vmem:[#allocation9 + $0x80] sm:$0xff]   ;;  %v1382_v5 = vld [vmem:[#allocation9 + $0x88] sm:$0xff]   ;;  %s1499_s9 = scalar_lea.vmem %s1498_s8, 512 }
  0x76   : > { %v291_v36 = vrot.slane %v289_v31, 7  ;;  %v299_v38 = vrot.slane %v297_v33, 7  ;;  %v1381_v4 = vld [vmem:[#allocation9 + $0x40] sm:$0xff]   ;;  %v1384_v9 = vld [vmem:[#allocation9 + $0x48] sm:$0xff]   ;;  %v1385_v10 = vld [vmem:[#allocation9 + $0x90] sm:$0xff]   ;;  %p1501_p9 = scmp.lt.s32.totalorder %s1499_s9, %s1493_s6 }
  0x77   : > { %v1383_v6 = vld [vmem:[#allocation9] sm:$0xff]   ;;  %v1397_v25 = vld [vmem:[#allocation9 + $0xb0] sm:$0xff]   ;;  %v1398_v26 = vld [vmem:[#allocation9 + $0x28] sm:$0xff]  }
  0x78   : > { %1185 = vmatpush3.bf16.msra.mxu0 %v1363_v11  ;;  %1247 = vmatpush3.bf16.msra.mxu1 %v1364_v12  ;;  %v295_v39 = vrot.slane %v291_v36, 4  ;;  %v294_v41 = vor.u32 %v292_v32, %v291_v36  ;;  %v302_v42 = vor.u32 %v300_v34, %v299_v38  ;;  %v304_v43 = vrot.slane %v299_v38, 4  ;;  %v635_v7 = vld [vmem:[#allocation3] sm:$0x1]  ;;  %v638_v11 = vld [vmem:[#allocation3 + $0x8] sm:$0x1]  ;;  %p1502_p12 = por %p1501_p9, %p1500_p7 }
  0x79   : > { %1186 = vmatprep.subr.bf16.mxu0 %v1365_v13  ;;  %1248 = vmatprep.subr.bf16.mxu1 %v1570_v0  ;;  %v636_v8 = vsel %vm1808_vm3, 0, %v635_v7  ;;  %v1386_v12 = vld [vmem:[#allocation9 + $0x8] sm:$0xff]   ;;  %v639_v13 = vsel %vm1815_vm5, 0, %v638_v11  ;;  %v1393_v18 = vld [vmem:[#allocation9 + $0x60] sm:$0xff]   ;;  %v1399_v27 = vld [vmem:[#allocation9 + $0x70] sm:$0xff]  }
  0x7a   : > { %v303_v45 = vsel %vm1829_vm7, %v295_v39, %v302_v42  ;;  %v310_v46 = vld [vmem:[#allocation2] sm:$0xf]  ;;  %637 = vst [vmem:[#allocation3] sm:$0x1] %v636_v8  ;;  %640 = vst [vmem:[#allocation3 + $0x8] sm:$0x1] %v639_v13  ;;  %p1503_p1 = pnand %p1502_p12, %p1496_p3 }
  0x7b   : > { %313 = vst [vmem:[#allocation2 + $0x4] sm:$0xf] %v303_v45  ;;  %v314_v47 = vld [vmem:[#allocation2 + $0x8] sm:$0x1]  ;;  %v311_v48 = vsel %vm1835_vm9, %v294_v41, %v310_v46  ;;  %v1400_v28 = vld [vmem:[#allocation9 + $0xb8] sm:$0xff]   ;;  %v1401_v29 = vld [vmem:[#allocation9 + $0x30] sm:$0xff]  }
  0x7c   : > { %1187 = vmatpush3.bf16.msra.mxu0 %v1366_v15  ;;  %1249 = vmatpush3.bf16.msra.mxu1 %v1367_v16  ;;  %v315_v49 = vsel %vm1808_vm3, %v304_v43, %v314_v47  ;;  %312 = vst [vmem:[#allocation2] sm:$0xf] %v311_v48  ;;  %v1387_v15 = vld [vmem:[#allocation9 + $0x50] sm:$0xff]   ;;  %v1388_v16 = vld [vmem:[#allocation9 + $0x98] sm:$0xff]  }
  0x7d   : > { %1188 = vmatprep.subr.bf16.mxu0 %v1368_v17  ;;  %1250 = vmatprep.subr.bf16.mxu1 %v1570_v0  ;;  %316 = vst [vmem:[#allocation2 + $0x8] sm:$0x1] %v315_v49  ;;  %v1389_v17 = vld [vmem:[#allocation9 + $0x10] sm:$0xff]   ;;  %v1405_v30 = vld [vmem:[#allocation9 + $0x78] sm:$0xff]  }
  0x7e   : > { %v1406_v31 = vld [vmem:[#allocation9 + $0x38] sm:$0xff]  }
  0x7f   : > { %v1114_v39 = vld [vmem:[%s1928_s2] ss:$0 sm:$0xff] }
  0x80   : > { %1189 = vmatpush3.bf16.msra.mxu0 %v1369_v19  ;;  %1251 = vmatpush3.bf16.msra.mxu1 %v1370_v20  ;;  %v1390_v19 = vld [vmem:[#allocation9 + $0x58] sm:$0xff]   ;;  %v1391_v20 = vld [vmem:[#allocation9 + $0xa0] sm:$0xff]  }
  0x81   : > { %1190 = vmatprep.subr.bf16.mxu0 %v1371_v21  ;;  %1252 = vmatprep.subr.bf16.mxu1 %v1570_v0  ;;  %v1392_v21 = vld [vmem:[#allocation9 + $0x18] sm:$0xff]  }
  0x82   : > { %v318_v50 = vld [vmem:[#allocation2 + $0x4] sm:$0xf] }
  0x83   : > { %v317_v51 = vld [vmem:[#allocation2] sm:$0xf] }
  0x84   : > { %1191 = vmatpush3.bf16.msra.mxu0 %v1372_v22  ;;  %1253 = vmatpush3.bf16.msra.mxu1 %v1373_v23  ;;  %v320_v52 = vld [vmem:[#allocation2] sm:$0xe]  ;;  %v1111_v53 = vcombine.low %v317_v51, %v318_v50  ;;  %v1377_v54 = vld [vmem:[#allocation2 + $0x8] ss:$0 sps:$4 sm:$0x11]   ;;  %v1394_v22 = vld [vmem:[#allocation9 + $0xa8] sm:$0xff]  }
  0x85   : > { %1192 = vmatprep.subr.bf16.mxu0 %v1374_v24  ;;  %1254 = vmatprep.subr.bf16.mxu1 %v1570_v0  ;;  %v1113_v55 = vcombine.low %v320_v52, %v318_v50  ;;  %v339_v58 = vshll.u32 %v1377_v54, 16  ;;  %v349_v60 = vrot.slane %v1377_v54, 1  ;;  %v1395_v23 = vld [vmem:[#allocation9 + $0x20] sm:$0xff]   ;;  %v1396_v24 = vld [vmem:[#allocation9 + $0x68] sm:$0xff]  }
  0x86   : > { %v332_v56 = vshrl.u32 %v1111_v53, 16  ;;  %v334_v57 = vshll.u32 %v1111_v53, 16 }
  0x87   : > { %v348_v59 = vrot.slane %v1113_v55, 1  ;;  %v341_v62 = vrot.slane %v339_v58, 1 }
  0x88   : > { %1193 = vmatpush3.bf16.msra.mxu0 %v1375_v37  ;;  %1255 = vmatpush3.bf16.msra.mxu1 %v1378_v40  ;;  %v336_v61 = vrot.slane %v334_v57, 1 }
  0x89   : > { %1260 = vmatprep.subr.bf16.mxu1 %v1570_v0  ;;  %v350_v63 = vsel %vm347_vm10, %v348_v59, %v349_v60  ;;  %1209 = vmatprep.subr.bf16.mxu0 %v1381_v4  ;;  %v671_v60 = vld [vmem:[#allocation3 + $0x8] sm:$0x1] }
  0x8a   : > { %v337_v1 = vor.u32 %v336_v61, %v332_v56  ;;  %v667_v56 = vld [vmem:[#allocation3] sm:$0xf] }
  0x8b   : > { %1257 = vmatmul.mubr.bf16.vlgmr.msra.gmra.mrb[0].mxu1 %v350_v63 }
  0x8c   : > { %1276 = vmatprep.mubr.msk.bf16.mxu1 %vm1571_vm0, %v1570_v0  ;;  %v342_v2 = vsel %vm330_vm11, %v337_v1, %v341_v62  ;;  %1261 = vmatpush3.bf16.msra.mxu1 %v1380_v3 }
  0x8d   : > { %583 = vmatprep.mubr.bf16.mxu0 %v342_v2  ;;  %1262 = vmatprep.subr.bf16.mxu1 %v1570_v0 }
  0x8e   : > { %584 = vmatmul.mubr.bf16.vlgmr.msra.gmra.mrb[0].mxu0 %v1111_v53 }
  0x8f   : > { %1210 = vmatpush3.bf16.msra.mxu0 %v1383_v6 }
  0x90   : > { %1263 = vmatpush3.bf16.msra.mxu1 %v1382_v5  ;;  %1211 = vmatprep.subr.bf16.mxu0 %v1384_v9 }
  0x91   : > { %1264 = vmatprep.subr.bf16.mxu1 %v1570_v0 }
  0x93   : > { %1212 = vmatpush3.bf16.msra.mxu0 %v1386_v12 }
  0x94   : > { %1265 = vmatpush3.bf16.msra.mxu1 %v1385_v10  ;;  %1213 = vmatprep.subr.bf16.mxu0 %v1387_v15 }
  0x95   : > { %1266 = vmatprep.subr.bf16.mxu1 %v1570_v0 }
  0x97   : > { %1214 = vmatpush3.bf16.msra.mxu0 %v1389_v17 }
  0x98   : > { %1267 = vmatpush3.bf16.msra.mxu1 %v1388_v16  ;;  %1215 = vmatprep.subr.bf16.mxu0 %v1390_v19 }
  0x99   : > { %1268 = vmatprep.subr.bf16.mxu1 %v1570_v0 }
  0x9b   : > { %1216 = vmatpush3.bf16.msra.mxu0 %v1392_v21 }
  0x9c   : > { %1269 = vmatpush3.bf16.msra.mxu1 %v1391_v20  ;;  %1217 = vmatprep.subr.bf16.mxu0 %v1393_v18 }
  0x9d   : > { %1270 = vmatprep.subr.bf16.mxu1 %v1570_v0 }
  0x9f   : > { %1218 = vmatpush3.bf16.msra.mxu0 %v1395_v23  ;;  %v1144_v23 = vld [vmem:[%s1930_s4] ss:$0 sm:$0xff] }
  0xa0   : > { %1271 = vmatpush3.bf16.msra.mxu1 %v1394_v22  ;;  %1219 = vmatprep.subr.bf16.mxu0 %v1396_v24 }
  0xa1   : > { %1272 = vmatprep.subr.bf16.mxu1 %v1570_v0 }
  0xa3   : > { %1220 = vmatpush3.bf16.msra.mxu0 %v1398_v26 }
  0xa4   : > { %1273 = vmatpush3.bf16.msra.mxu1 %v1397_v25  ;;  %1221 = vmatprep.subr.bf16.mxu0 %v1399_v27 }
  0xa5   : > { %1274 = vmatprep.subr.bf16.mxu1 %v1570_v0 }
  0xa7   : > { %1222 = vmatpush3.bf16.msra.mxu0 %v1401_v29 }
  0xa8   : > { %1275 = vmatpush3.bf16.msra.mxu1 %v1400_v28  ;;  %1223 = vmatprep.subr.bf16.mxu0 %v1405_v30 }
  0xab   : > { %1224 = vmatpush3.bf16.msra.mxu0 %v1406_v31 }
 0x15e   : > { %v626_v32 = vpop.f32.mrb[0].mxu1 }
 0x15f   : > { %v1258_v33 = vpop.f32.mrb[1].mxu1 }
 0x160   : > { %v629_v34 = vpop.f32.mrb[2].mxu1 }
 0x161   : > { %v1259_v36 = vpop.f32.mrb[3].mxu1  ;;  %v1194_v37 = vpop.f32.mrb[0].mxu0 }
 0x162   : > { %v1195_v38 = vpop.f32.mrb[1].mxu0 }
 0x163   : > { %v1196_v40 = vadd.f32 %v1195_v38, %v1194_v37  ;;  %v1197_v0 = vpop.f32.mrb[2].mxu0 }
 0x164   : > { %v1198_v41 = vpop.f32.mrb[3].mxu0 }
 0x165   : > { %v586_v42 = vadd.f32 %v1196_v40, %v1114_v39  ;;  %v1199_v43 = vadd.f32 %v1198_v41, %v1197_v0 }
 0x167   : > { %v627_v45 = vadd.f32 %v626_v32, %v586_v42  ;;  %v589_v46 = vadd.f32 %v1199_v43, %v1114_v39 }
 0x169   : > { %v633_v47 = vmax.f32 %v627_v45, 0.0  ;;  %v630_v48 = vadd.f32 %v629_v34, %v589_v46 }
 0x16b   : > { %v1175_v49 = vpack.c.bf16 %v633_v47, %v633_v47  ;;  %v634_v50 = vmax.f32 %v630_v48, 0.0 }
 0x16d   : > { %v648_v51 = vshrl.u32 %v1175_v49, 16  ;;  %v1176_v52 = vpack.c.bf16 %v634_v50, %v634_v50  ;;  %v651_v54 = vshll.u32 %v1175_v49, 16 }
 0x16f   : > { %v650_v53 = vrot.slane %v648_v51, 7  ;;  %v656_v55 = vshrl.u32 %v1176_v52, 16  ;;  %v659_v59 = vshll.u32 %v1176_v52, 16 }
 0x171   : > { %v653_v57 = vor.u32 %v651_v54, %v650_v53  ;;  %v658_v58 = vrot.slane %v656_v55, 7  ;;  %v654_v61 = vrot.slane %v650_v53, 4 }
 0x173   : > { %v668_v62 = vsel %vm1835_vm9, %v653_v57, %v667_v56  ;;  %v661_v63 = vor.u32 %v659_v59, %v658_v58  ;;  %v663_v1 = vrot.slane %v658_v58, 4 }
 0x174   : > { %669 = vst [vmem:[#allocation3] sm:$0xf] %v668_v62 }
 0x175   : > { %v662_v2 = vsel %vm1829_vm7, %v654_v61, %v661_v63  ;;  %v672_v3 = vsel %vm1808_vm3, %v663_v1, %v671_v60 }
 0x176   : > { %670 = vst [vmem:[#allocation3 + $0x4] sm:$0xf] %v662_v2  ;;  %673 = vst [vmem:[#allocation3 + $0x8] sm:$0x1] %v672_v3 }
 0x17b   : > { %v674_v4 = vld [vmem:[#allocation3] sm:$0xf] }
 0x17c   : > { %v677_v6 = vld [vmem:[#allocation3] sm:$0xe] }
 0x17d   : > { %v675_v5 = vld [vmem:[#allocation3 + $0x4] sm:$0xf]  ;;  %v1403_v8 = vld [vmem:[#allocation3 + $0x8] ss:$0 sps:$4 sm:$0x11]  }
 0x17e   : > { %v1141_v7 = vcombine.low %v674_v4, %v675_v5  ;;  %v1143_v9 = vcombine.low %v677_v6, %v675_v5  ;;  %v704_v44 = vrot.slane %v1403_v8, 1  ;;  %v695_v12 = vshll.u32 %v1403_v8, 16 }
 0x180   : > { %v703_v10 = vrot.slane %v1143_v9, 1  ;;  %v690_v11 = vshll.u32 %v1141_v7, 16  ;;  %v688_v35 = vshrl.u32 %v1141_v7, 16  ;;  %v697_v16 = vrot.slane %v695_v12, 1 }
 0x182   : > { %v705_v13 = vsel %vm347_vm10, %v703_v10, %v704_v44  ;;  %v692_v15 = vrot.slane %v690_v11, 1 }
 0x183   : > { %1277 = vmatmul.mubr.bf16.vlgmr.msra.gmra.mrb[4].mxu1 %v705_v13 }
 0x184   : > { %v693_v14 = vor.u32 %v692_v15, %v688_v35 }
 0x186   : > { %v698_v17 = vsel %vm330_vm11, %v693_v14, %v697_v16 }
 0x187   : > { %938 = vmatprep.mubr.bf16.mxu0 %v698_v17 }
 0x188   : > { %939 = vmatmul.mubr.bf16.vlgmr.msra.gmra.mrb[4].mxu0 %v1141_v7 }
 0x256   : > { %v981_v19 = vpop.f32.mrb[4].mxu1 }
 0x257   : > { %v1278_v20 = vpop.f32.mrb[5].mxu1 }
 0x258   : > { %v984_v21 = vpop.f32.mrb[6].mxu1 }
 0x259   : > { %v1279_v18 = vpop.f32.mrb[7].mxu1 }
 0x25b   : > { %v1225_v22 = vpop.f32.mrb[4].mxu0 }
 0x25c   : > { %v1226_v24 = vpop.f32.mrb[5].mxu0 }
 0x25d   : > { %v1227_v25 = vadd.f32 %v1226_v24, %v1225_v22  ;;  %v1228_v26 = vpop.f32.mrb[6].mxu0 }
 0x25e   : > { %v1229_v27 = vpop.f32.mrb[7].mxu0 }
 0x25f   : > { %v941_v28 = vadd.f32 %v1227_v25, %v1144_v23  ;;  %v1230_v29 = vadd.f32 %v1229_v27, %v1228_v26 }
 0x261   : > { %v982_v30 = vadd.f32 %v981_v19, %v941_v28  ;;  %v944_v31 = vadd.f32 %v1230_v29, %v1144_v23 }
 0x263   : > { %v988_v32 = vmax.f32 %v982_v30, 0.0  ;;  %v985_v33 = vadd.f32 %v984_v21, %v944_v31 }
 0x265   : > { %990 = vst [vmem:[%s271_s28] sm:$0xff] %v988_v32  ;;  %v989_v34 = vmax.f32 %v985_v33, 0.0 }
 0x267   : > { %991 = vst [vmem:[%s271_s28 + $0x8] sm:$0xff] %v989_v34 }
 0x268   : > { %1506 = shalt.err (!%p1503_p1)
}
 0x269   : > { %s1507_s24 = scalar_lea.hbm %s1882_s17, 256  ;;  %s1511_s16 = scalar_lea.hbm %s1931_s5, 512 }
 0x26a   : > { %p1508_p13 = scmp.ne.s32.totalorder %s1882_s17, %s1507_s24  ;;  %p1512_p4 = scmp.lt.u32.totalorder %s1882_s17, %s1931_s5 }
 0x26b   : > { %p1513_p5 = scmp.lt.u32.totalorder %s1511_s16, %s1507_s24  ;;  %p1515_p11 = scmp.lt.u32.totalorder %s1507_s24, %s1882_s17 }
 0x26c   : > { %p1509_p6 = pnand %p1508_p13, %p1953_p0 }
 0x26d   : > { %p1514_p8 = por %p1513_p5, %p1512_p4 }
 0x26e   : > { %p1510_p10 = pneg %p1509_p6 }
 0x26f   : > { %p1516_p2 = por %p1515_p11, %p1514_p8 }
 0x271   : > { %p1517_p3 = pnand %p1516_p2, %p1510_p10 }
 0x273   : > { %1520 = shalt.err (!%p1517_p3)
}
 0x274   : > { %s1573_s13 = smov 128   ;;  %s1574_s30 = smov 8  }
 0x275   : > { %1290 = dma.vmem_to_hbm [thread:$0]  (%p1953_p0), %s1877_s12, 256, %s1882_s17, %s993_s7, %s1573_s13, %s1573_s13, %s1574_s30  }
 0x276 PF: > { %s1021_s11 = sand.u32 1, %s1551_s18   ;;  %p1954_p7 = scmp.ne.s32.totalorder %s1936_s25, 0 }
 0x277   : > { %p1955_p9 = scmp.ge.s32.totalorder %s1563_s21, 2  ;;  %s1022_s6 = scalar_lea.sflag [#allocation6], %s1021_s11 }
 0x279   : > { %p1304_p12 = pnand %p1955_p9, %p1954_p7 }
 0x27b   : > { %1546 = dma.done.wait (!%p1304_p12), %s1022_s6, 256  }
 0x27c   : > { %1548 = vsyncadd (!%p1304_p12), %s1022_s6, 4294967040  ;;  %p19_p1 = scmp.ge.s32.totalorder %s1721_s29, 4   ;;  %s1956_s18 = smov %s1555_s19 }
 0x27d   : > { %s1957_s19 = smov %s1559_s20  ;;  %s1958_s20 = smov %s1737_s27 }
 0x27e   : > { %s1959_s21 = smov %s1721_s29  ;;  %21 = sbr.rel (!%p19_p1) target bundleno = 6 (0x6), region = 93 }
 0x285   :  { %1027 = vsyncpa [#allocation5], 1 }
 0x286   :  { %1029 = vsyncpa [#allocation5 + $0x1], 1 }
 0x287   :  { %1030 = vsyncpa [#allocation8], 1 }
 0x288   :  { %1031 = vsyncpa [#allocation6], 1 }
 0x289   :  { %1033 = vsyncpa [#allocation6 + $0x1], 1 }

</bundles_post_ra>
